<compile_context>
chip_gen: v7x
topology: tpu7x:2x2x1
jax: 0.10.0
libtpu: 0.0.40
codegen_flags: <defaults>
</compile_context>

<pallas_src>
import jax
import jax.numpy as jnp
from jax.experimental import pallas as pl
from jax.experimental.pallas import tpu as pltpu

EPS_TINY = 1e-06
_NEG_FILL = -1e30          # padded-class logit: exp(-1e30 - m) == 0 exactly
_LANE = 128
_SUBLANE = 8


def f_divergence(logits, targets_idx, nclass, *, tile_b_max=256):
    """Pallas forward pass of fDivergence for (B, C) logits + (B,) int targets."""
    assert nclass >= 2, "Number of classes must be at least 2"
    B, C = logits.shape
    assert C == nclass, "class axis of logits must equal nclass"

    # --- lane-pad the class axis; padded classes get exactly zero softmax mass.
    c_pad = int(pl.cdiv(C, _LANE)) * _LANE
    if c_pad != C:
        fill = jnp.full((B, c_pad - C), _NEG_FILL, dtype=logits.dtype)
        logits = jnp.concatenate([logits, fill], axis=1)

    # --- pick a sublane-aligned batch tile and pad B up to a multiple of it.
    # tile_b_max is sized for the smallest per-TC VMEM (v7x: 64 MiB physical,
    # 32 MiB scoped); raise it (and vmem_limit_bytes) on v5e/v6e if desired.
    if B <= tile_b_max:
        tile_b = int(pl.cdiv(B, _SUBLANE)) * _SUBLANE   # single grid step
    else:
        tile_b = int(tile_b_max)
    assert tile_b % _SUBLANE == 0
    b_pad = int(pl.cdiv(B, tile_b)) * tile_b
    if b_pad != B:
        logits = jnp.concatenate(
            [logits, jnp.zeros((b_pad - B, c_pad), dtype=logits.dtype)], axis=0)
        targets_idx = jnp.concatenate(
            [targets_idx, jnp.zeros((b_pad - B,), dtype=targets_idx.dtype)], axis=0)
    targets_2d = targets_idx.astype(jnp.int32).reshape(b_pad, 1)
    num_tiles = b_pad // tile_b

    def kernel(logits_ref, targets_ref, out_ref):
        x = logits_ref[...].astype(jnp.float32)          # (tile_b, c_pad) in-kernel upcast
        tgt = targets_ref[...]                           # (tile_b, 1) int32
        tb, cb = x.shape

        # one-hot mask built in-kernel (no (B, C) one-hot DMA'd from HBM)
        cls = jax.lax.broadcasted_iota(jnp.int32, (tb, cb), 1)
        t = (cls == tgt).astype(jnp.float32)

        # softmax over the class (lane) axis, f32
        m = jnp.max(x, axis=1, keepdims=True)
        e = jnp.exp(x - m)
        denom = jnp.sum(e, axis=1, keepdims=True)
        # exact reciprocal keeps results within the test tolerance;
        # pl.reciprocal(denom, approx=True) moves this to the EUP when a looser
        # tolerance is acceptable.
        p = e * pl.reciprocal(denom)

        # f-divergence terms: f(r) = r*log(r) - r + 1
        safe_p = jnp.maximum(p, EPS_TINY)
        ratio = jnp.maximum(t / safe_p, EPS_TINY)
        f_vals = ratio * jnp.log(ratio) - ratio + 1.0
        contrib = p * f_vals                             # (tile_b, c_pad)

        # mask padded batch rows so the wrapper divides by the true B exactly once
        row0 = pl.program_id(0) * tile_b
        rows = row0 + jax.lax.broadcasted_iota(jnp.int32, (tb, 1), 0)
        contrib = jnp.where(rows < B, contrib, 0.0)

        out_ref[0, 0] = jnp.sum(contrib)                 # per-tile partial sum

    partial_sums = pl.pallas_call(
        kernel,
        out_shape=jax.ShapeDtypeStruct((num_tiles, 1), jnp.float32),
        grid=(num_tiles,),
        in_specs=[
            pl.BlockSpec((tile_b, c_pad), lambda i: (i, 0)),   # logits tile (native dtype)
            pl.BlockSpec((tile_b, 1), lambda i: (i, 0)),       # int32 target indices
        ],
        out_specs=pl.BlockSpec((1, 1), lambda i: (i, 0),
                               memory_space=pltpu.MemorySpace.SMEM),
        compiler_params=pltpu.CompilerParams(
            dimension_semantics=("parallel",)),
    )(logits, targets_2d)

    # TODO(synk): for class counts too large for a single block, tile C with an
    # online-softmax (running max/sum) instead of shrinking tile_b.
    return jnp.sum(partial_sums) / B


def _f_divergence_ref(logits, targets_idx, nclass):
    """Pure-JAX reference mirroring the PyTorch module (softmax_logits=True,
    softmax_gt skipped because one-hot rows sum to 1)."""
    t = jax.nn.one_hot(targets_idx, nclass, dtype=jnp.float32)
    p = jax.nn.softmax(logits.astype(jnp.float32), axis=1)
    safe_p = jnp.maximum(p, EPS_TINY)
    ratio = jnp.maximum(t / safe_p, EPS_TINY)
    f_vals = ratio * jnp.log(ratio) - ratio + 1.0
    return (p * f_vals).sum(axis=1).mean()


if __name__ == "__main__":
    key = jax.random.PRNGKey(0)
    k1, k2, k3, k4 = jax.random.split(key, 4)

    # --- small demo shape (B=8, C=16): single grid step, class axis lane-padded
    B, C = 8, 16
    logits = jax.random.normal(k1, (B, C), dtype=jnp.float32)
    targets = jax.random.randint(k2, (B,), 0, C, dtype=jnp.int32)
    loss = f_divergence(logits, targets, C)
    jax.block_until_ready(loss)
    ref = _f_divergence_ref(logits, targets, C)
    assert jnp.allclose(loss, ref, rtol=1e-5, atol=1e-5), (loss, ref)

    # --- non-aligned B/C, multiple batch tiles, bf16 logits (in-kernel upcast)
    B2, C2 = 37, 50
    logits2 = jax.random.normal(k3, (B2, C2), dtype=jnp.bfloat16)
    targets2 = jax.random.randint(k4, (B2,), 0, C2, dtype=jnp.int32)
    loss2 = f_divergence(logits2, targets2, C2, tile_b_max=16)
    jax.block_until_ready(loss2)
    ref2 = _f_divergence_ref(logits2, targets2, C2)
    assert jnp.allclose(loss2, ref2, rtol=1e-4, atol=1e-4), (loss2, ref2)

    print("KERNEL_OK")
</pallas_src>

<mosaic_0001>
module attributes {stable_mosaic.version = 11 : i64} {
  func.func @kernel(%arg0: i32, %arg1: memref<8x128xf32, #tpu.memory_space<vmem>>, %arg2: memref<8x1xi32, #tpu.memory_space<vmem>>, %arg3: memref<1x1xf32, #tpu.memory_space<smem>>) attributes {dimension_semantics = [#tpu.dimension_semantics<parallel>], iteration_bounds = array<i64: 1>, scalar_prefetch = 0 : i64, scratch_operands = 0 : i64, tpu.core_type = #tpu.core_type<tc>, window_params = [{transform_indices = @transform_0, window_bounds = array<i64: 8, 128>}, {transform_indices = @transform_1, window_bounds = array<i64: 8, 1>}, {transform_indices = @transform_2, window_bounds = array<i64: 1, 1>}]} {
    %c0 = arith.constant 0 : index
    %c0_0 = arith.constant 0 : index
    %0 = vector.load %arg1[%c0, %c0_0] : memref<8x128xf32, #tpu.memory_space<vmem>>, vector<8x128xf32>
    %c0_1 = arith.constant 0 : index
    %c0_2 = arith.constant 0 : index
    %1 = vector.load %arg2[%c0_1, %c0_2] : memref<8x1xi32, #tpu.memory_space<vmem>>, vector<8x1xi32>
    %2 = tpu.iota {dimensions = array<i32: 1>} : vector<8x128xi32>
    %3 = vector.broadcast %1 : vector<8x1xi32> to vector<8x128xi32>
    %4 = arith.cmpi eq, %2, %3 : vector<8x128xi32>
    %5 = arith.extui %4 : vector<8x128xi1> to vector<8x128xi32>
    %6 = arith.sitofp %5 : vector<8x128xi32> to vector<8x128xf32>
    %cst = arith.constant dense<0xFF800000> : vector<8xf32>
    %7 = vector.multi_reduction <maximumf>, %0, %cst [1] : vector<8x128xf32> to vector<8xf32>
    %8 = vector.shape_cast %7 : vector<8xf32> to vector<8x1xf32>
    %9 = vector.broadcast %8 : vector<8x1xf32> to vector<8x128xf32>
    %10 = arith.subf %0, %9 : vector<8x128xf32>
    %11 = math.exp %10 : vector<8x128xf32>
    %cst_3 = arith.constant dense<0.000000e+00> : vector<8xf32>
    %12 = vector.multi_reduction <add>, %11, %cst_3 [1] : vector<8x128xf32> to vector<8xf32>
    %13 = vector.shape_cast %12 : vector<8xf32> to vector<8x1xf32>
    %14 = tpu.reciprocal %13 : vector<8x1xf32> -> vector<8x1xf32>
    %15 = vector.broadcast %14 : vector<8x1xf32> to vector<8x128xf32>
    %16 = arith.mulf %11, %15 : vector<8x128xf32>
    %cst_4 = arith.constant 9.99999997E-7 : f32
    %17 = vector.broadcast %cst_4 : f32 to vector<8x128xf32>
    %18 = arith.maximumf %16, %17 : vector<8x128xf32>
    %19 = arith.divf %6, %18 : vector<8x128xf32>
    %cst_5 = arith.constant 9.99999997E-7 : f32
    %20 = vector.broadcast %cst_5 : f32 to vector<8x128xf32>
    %21 = arith.maximumf %19, %20 : vector<8x128xf32>
    %22 = math.log %21 : vector<8x128xf32>
    %23 = arith.mulf %21, %22 : vector<8x128xf32>
    %24 = arith.subf %23, %21 : vector<8x128xf32>
    %cst_6 = arith.constant 1.000000e+00 : f32
    %25 = vector.broadcast %cst_6 : f32 to vector<8x128xf32>
    %26 = arith.addf %24, %25 : vector<8x128xf32>
    %27 = arith.mulf %16, %26 : vector<8x128xf32>
    %c8_i32 = arith.constant 8 : i32
    %28 = arith.muli %arg0, %c8_i32 : i32
    %29 = tpu.iota {dimensions = array<i32: 0>} : vector<8x1xi32>
    %30 = vector.broadcast %28 : i32 to vector<8x1xi32>
    %31 = arith.addi %30, %29 : vector<8x1xi32>
    %c8_i32_7 = arith.constant 8 : i32
    %32 = vector.broadcast %c8_i32_7 : i32 to vector<8x1xi32>
    %33 = arith.cmpi slt, %31, %32 : vector<8x1xi32>
    %cst_8 = arith.constant 0.000000e+00 : f32
    %34 = vector.shape_cast %33 : vector<8x1xi1> to vector<8x1xi1>
    %35 = vector.broadcast %34 : vector<8x1xi1> to vector<8x128xi1>
    %36 = vector.broadcast %cst_8 : f32 to vector<8x128xf32>
    %37 = arith.select %35, %27, %36 : vector<8x128xi1>, vector<8x128xf32>
    %38 = vector.shape_cast %37 : vector<8x128xf32> to vector<1x8x128xf32>
    %cst_9 = arith.constant dense<0.000000e+00> : vector<1xf32>
    %39 = vector.multi_reduction <add>, %38, %cst_9 [1, 2] : vector<1x8x128xf32> to vector<1xf32>
    %40 = vector.shape_cast %39 : vector<1xf32> to vector<1x1x1xf32>
    %41 = vector.extract %40[0, 0, 0] : f32 from vector<1x1x1xf32>
    %c0_10 = arith.constant 0 : index
    %c0_11 = arith.constant 0 : index
    %42 = memref.load %arg3[%c0_10, %c0_11] : memref<1x1xf32, #tpu.memory_space<smem>>
    memref.store %41, %arg3[%c0_10, %c0_11] : memref<1x1xf32, #tpu.memory_space<smem>>
    return
  }
  func.func @transform_0(%arg0: i32) -> (i32, i32) {
    %c0_i32 = arith.constant 0 : i32
    %c0_i32_0 = arith.constant 0 : i32
    return %arg0, %c0_i32 : i32, i32
  }
  func.func @transform_1(%arg0: i32) -> (i32, i32) {
    %c0_i32 = arith.constant 0 : i32
    %c0_i32_0 = arith.constant 0 : i32
    return %arg0, %c0_i32 : i32, i32
  }
  func.func @transform_2(%arg0: i32) -> (i32, i32) {
    %c0_i32 = arith.constant 0 : i32
    %c0_i32_0 = arith.constant 0 : i32
    return %arg0, %c0_i32 : i32, i32
  }
}

</mosaic_0001>

<bundles_post_ra>
// kernel: tpu_custom_call.1
= control target key start
LH: loop header
LB: loop body
LE: loop exit
PB: predicated region body
PF: predicated region fallthrough
CT: control target
= control target key end

     0   :  { %s138_s0 = inlined_call_operand.vmem [shape: f32[8,128], index: 0, kind: input, shape index: {}]   ;;  %s139_s1 = inlined_call_operand.vmem [shape: s32[8,1], index: 1, kind: input, shape index: {}]   ;;  %s140_s2 = inlined_call_operand.hbm [shape: f32[1,1], index: 2, kind: output, shape index: {}]  }
   0x1   :  { %v12_v0 = vld [vmem:[%s138_s0] sm:$0xff] }
   0x2   :  { %7 = vsyncpa [#allocation3], 0  ;;  %22 = vmax.xlane.f32.xlu0 %v12_v0  ;;  %v13_v1 = vld [vmem:[%s139_s1] sm:$0xff]  ;;  %v102_v2 = vmov 0   ;;  %v14_v10 = vlaneseq  ;;  %v103_v14 = vmov 0.0   ;;  %s90_s14 = scalar_lea.hbm %s140_s2, 16 }
   0x3   :  { %80 = vset.pattern.permute.xlu1 %v102_v2  ;;  %81 = vset.pattern.permute.xlu0 %v102_v2  ;;  %p91_p0 = scmp.ne.s32.totalorder %s140_s2, %s90_s14  ;;  %p94_p1 = scmp.lt.u32.totalorder %s90_s14, %s140_s2 }
   0x4   :  { %17 = vperm.xlu1 %80, %v13_v1   ;;  %v15_v12 = vand.u32 127, %v14_v10 }
   0x5   :  { %p96_p2 = pnand %p94_p1, %p91_p0 }
  0x83   :  { %v18_v13 = vpop.permute.xlu1 %17 }
  0x84   :  { %vm19_vm0 = vcmp.eq.s32.totalorder %v15_v12, %v18_v13 }
  0x85   :  { %v74_v15 = vsel %vm19_vm0, 1.0, %v103_v14 }
  0x8f   :  { %v23_v3 = vpop.xlane.xlu0 %22 }
  0x90   :  { %v24_v4 = vsub.f32 %v12_v0, %v23_v3 }
  0x92   :  { %v25_v5 = vmul.f32 1.442695, %v24_v4 }
  0x94   :  { %82 = vpow2.f32 %v25_v5 }
  0x9e   :  { %v83_v6 = vpop.eup %82 }
  0x9f   :  { %27 = vadd.xlane.f32.xlu0 %v83_v6 }
 0x12c   :  { %v28_v7 = vpop.xlane.xlu0 %27 }
 0x12d   :  { %84 = vrcp.f32 %v28_v7 }
 0x137   :  { %v85_v8 = vpop.eup %84 }
 0x138   :  { %v30_v9 = vmul.f32 %v85_v8, %v83_v6 }
 0x13a   :  { %v31_v11 = vmax.f32 %v30_v9, 1e-06 }
 0x13c   :  { %86 = vrcp.f32 %v31_v11 }
 0x146   :  { %v87_v16 = vpop.eup %86 }
 0x147   :  { %v33_v17 = vmul.f32 %v87_v16, %v74_v15 }
 0x149   :  { %v34_v18 = vmax.f32 %v33_v17, 1e-06 }
 0x14b   :  { %88 = vlog2.f32 %v34_v18 }
 0x155   :  { %v89_v19 = vpop.eup %88 }
 0x156   :  { %v36_v20 = vmul.f32 0.6931472, %v89_v19 }
 0x158   :  { %v37_v21 = vmul.f32 %v36_v20, %v34_v18 }
 0x15a   :  { %v38_v22 = vsub.f32 %v37_v21, %v34_v18 }
 0x15c   :  { %v39_v23 = vadd.f32 1.0, %v38_v22 }
 0x15e   :  { %v40_v24 = vmul.f32 %v39_v23, %v30_v9 }
 0x160   :  { %50 = vadd.xlane.f32.xlu1 %v40_v24 }
 0x1ed   :  { %v51_v25 = vpop.xlane.xlu1 %50 }
 0x1ee   :  { %v52_v26 = vrot.slane %v51_v25, 4 }
 0x1f0   :  { %v53_v27 = vadd.f32 %v52_v26, %v51_v25 }
 0x1f2   :  { %v54_v28 = vrot.slane %v53_v27, 2 }
 0x1f4   :  { %v55_v29 = vadd.f32 %v54_v28, %v53_v27 }
 0x1f6   :  { %v56_v30 = vrot.slane %v55_v29, 1 }
 0x1f8   :  { %v57_v31 = vadd.f32 %v56_v30, %v55_v29 }
 0x1fa   :  { %75 = vpush %v57_v31 }
 0x22b   :  { %s76_s0 = spop %75 }
 0x22c   :  { %60 = sst [smem:[#allocation2]] %s76_s0 }
 0x22d   :  { %99 = shalt.err (!%p96_p2)
}
 0x22e   :  { %s104_s19 = smov [#allocation2]  }
 0x22f   :  { %68 = dma.smem_to_hbm %s104_s19, 16, %s140_s2, [#allocation3]  }
 0x230   :  { %100 = dma.done.wait [#allocation3], 16  }
 0x231   :  { %101 = vsyncadd [#allocation3], 4294967280 }
 0x232   :  { %72 = sfence }
 0x233   :  { %73 = vsyncpa [#allocation3], 1 }

</bundles_post_ra>
